<compile_context>
chip_gen: v5e
topology: v5e:2x2
jax: 0.10.0
libtpu: 0.0.40
codegen_flags: <defaults>
</compile_context>

<pallas_src>
import math

import jax
import jax.numpy as jnp
import numpy as np
from jax.experimental import pallas as pl
from jax.experimental.pallas import tpu as pltpu

MAX_PERIOD = 10000.0


def _round_up(x, m):
    return (x + m - 1) // m * m


def timestep_embedder_kernel(t_ref, freqs_ref, w1_ref, b_ref, w2_ref, out_ref):
    """One N-tile of the forward pass.

    t_ref:     (tn, 1)       f32   timesteps for this tile
    freqs_ref: (1, half)     f32   precomputed sinusoid frequencies
    w1_ref:    (2*half, Hp)  bf16  first Linear weight, (in, out) layout
    b_ref:     (2, Hp)       f32   row 0 = b1, row 1 = b2
    w2_ref:    (Hp, Hp)      bf16  second Linear weight, (in, out) layout
    out_ref:   (tn, Hp)      f32
    """
    args = t_ref[...] * freqs_ref[...]                      # (tn, half) f32
    # emb = concat([cos, sin], -1): lane-aligned concat, single 2*half-deep
    # MXU contraction instead of two half-width matmuls + VPU add.
    emb = jnp.concatenate([jnp.cos(args), jnp.sin(args)], axis=-1)

    h = jnp.dot(emb.astype(w1_ref.dtype), w1_ref[...],
                preferred_element_type=jnp.float32) + b_ref[0:1, :]
    h = h * jax.nn.sigmoid(h)                               # SiLU in f32

    out = jnp.dot(h.astype(w2_ref.dtype), w2_ref[...],
                  preferred_element_type=jnp.float32) + b_ref[1:2, :]
    out_ref[...] = out.astype(out_ref.dtype)


def timestep_embedder(t, w1, b1, w2, b2, frequency_embedding_size=256,
                      tile_n=256):
    """t: (N,) f32.  w1: (freq, H), b1: (H,), w2: (H, H), b2: (H,).

    Weights are stored transposed vs PyTorch, i.e. (in_features, out_features),
    so y = x @ W + b.
    """
    # TODO(synk): odd frequency_embedding_size zero-pad branch not implemented
    # (module default 256 is even).
    assert frequency_embedding_size % 2 == 0
    n = t.shape[0]
    hidden = w1.shape[1]
    half = frequency_embedding_size // 2

    # Lane-dense hidden dim: pad to a multiple of 128.
    hp = _round_up(hidden, 128)
    # Tile over N; weights stay resident across the grid.
    tn = min(tile_n, _round_up(n, 8))
    n_pad = _round_up(n, tn)

    t_pad = jnp.zeros((n_pad, 1), jnp.float32).at[:n, 0].set(
        t.astype(jnp.float32))
    freqs = jnp.exp(
        -math.log(MAX_PERIOD) * jnp.arange(half, dtype=jnp.float32) / half
    ).reshape(1, half)

    # bf16 weights (dominant HBM->VMEM bytes); biases stay f32 (added after
    # the f32-accumulated matmul).
    w1p = jnp.zeros((frequency_embedding_size, hp), jnp.bfloat16)
    w1p = w1p.at[:, :hidden].set(w1.astype(jnp.bfloat16))
    w2p = jnp.zeros((hp, hp), jnp.bfloat16)
    w2p = w2p.at[:hidden, :hidden].set(w2.astype(jnp.bfloat16))
    biases = jnp.zeros((2, hp), jnp.float32)
    biases = biases.at[0, :hidden].set(b1.astype(jnp.float32))
    biases = biases.at[1, :hidden].set(b2.astype(jnp.float32))

    grid = (n_pad // tn,)
    pinned = lambda i: (0, 0)

    flops = 2 * n_pad * (frequency_embedding_size * hp + hp * hp)
    transcendentals = n_pad * (frequency_embedding_size + hp)  # cos+sin+sigmoid
    bytes_accessed = (t_pad.size * 4 + freqs.size * 4 + biases.size * 4
                      + w1p.size * 2 + w2p.size * 2 + n_pad * hp * 4)

    out = pl.pallas_call(
        timestep_embedder_kernel,
        out_shape=jax.ShapeDtypeStruct((n_pad, hp), jnp.float32),
        grid_spec=pltpu.PrefetchScalarGridSpec(
            num_scalar_prefetch=0,
            grid=grid,
            in_specs=[
                pl.BlockSpec((tn, 1), lambda i: (i, 0)),              # t
                pl.BlockSpec((1, half), pinned),                      # freqs
                pl.BlockSpec((frequency_embedding_size, hp), pinned),  # w1
                pl.BlockSpec((2, hp), pinned),                        # b1/b2
                pl.BlockSpec((hp, hp), pinned),                       # w2
            ],
            out_specs=pl.BlockSpec((tn, hp), lambda i: (i, 0)),
        ),
        compiler_params=pltpu.CompilerParams(
            dimension_semantics=("parallel",)),
        cost_estimate=pl.CostEstimate(
            flops=flops,
            transcendentals=transcendentals,
            bytes_accessed=bytes_accessed),
    )(t_pad, freqs, w1p, biases, w2p)

    return out[:n, :hidden]


def timestep_embedder_ref(t, w1, b1, w2, b2, frequency_embedding_size=256):
    """Pure-JAX f32 reference mirroring the PyTorch module."""
    half = frequency_embedding_size // 2
    freqs = jnp.exp(-math.log(MAX_PERIOD)
                    * jnp.arange(half, dtype=jnp.float32) / half)
    args = t.astype(jnp.float32)[:, None] * freqs[None, :]
    emb = jnp.concatenate([jnp.cos(args), jnp.sin(args)], axis=-1)
    h = emb @ w1 + b1
    h = h * jax.nn.sigmoid(h)
    return h @ w2 + b2


if __name__ == "__main__":
    key = jax.random.PRNGKey(0)
    k_t, k_w1, k_b1, k_w2, k_b2 = jax.random.split(key, 5)

    N = 8        # batch of timesteps
    FREQ = 256   # frequency_embedding_size (module default)
    HIDDEN = 32  # hidden_size

    # deterministic synthetic parameters (PyTorch stores (out,in); here (in,out))
    t = jax.random.uniform(k_t, (N,), jnp.float32, 0.0, 1000.0)
    w1 = jax.random.normal(k_w1, (FREQ, HIDDEN), jnp.float32) * 0.02
    b1 = jax.random.normal(k_b1, (HIDDEN,), jnp.float32) * 0.02
    w2 = jax.random.normal(k_w2, (HIDDEN, HIDDEN), jnp.float32) * 0.02
    b2 = jax.random.normal(k_b2, (HIDDEN,), jnp.float32) * 0.02

    out = timestep_embedder(t, w1, b1, w2, b2, FREQ)
    out = jax.block_until_ready(out)

    ref = timestep_embedder_ref(t, w1, b1, w2, b2, FREQ)
    # bf16 weights in the kernel (f32 accumulation) -> loosened tolerance
    # vs the all-f32 reference.
    np.testing.assert_allclose(np.asarray(out), np.asarray(ref),
                               rtol=2e-2, atol=2e-3)
    print("KERNEL_OK")
</pallas_src>

<mosaic_0001>
module attributes {stable_mosaic.version = 11 : i64} {
  func.func @timestep_embedder_kernel(%arg0: i32, %arg1: memref<8x1xf32, #tpu.memory_space<vmem>>, %arg2: memref<1x128xf32, #tpu.memory_space<vmem>>, %arg3: memref<256x128xbf16, #tpu.memory_space<vmem>>, %arg4: memref<2x128xf32, #tpu.memory_space<vmem>>, %arg5: memref<128x128xbf16, #tpu.memory_space<vmem>>, %arg6: memref<8x128xf32, #tpu.memory_space<vmem>>) attributes {dimension_semantics = [#tpu.dimension_semantics<parallel>], iteration_bounds = array<i64: 1>, scalar_prefetch = 0 : i64, scratch_operands = 0 : i64, tpu.core_type = #tpu.core_type<tc>, window_params = [{transform_indices = @transform_0, window_bounds = array<i64: 8, 1>}, {pipeline_mode = #tpu.pipeline_mode<synchronous>, transform_indices = @transform_1, window_bounds = array<i64: 1, 128>}, {pipeline_mode = #tpu.pipeline_mode<synchronous>, transform_indices = @transform_2, window_bounds = array<i64: 256, 128>}, {pipeline_mode = #tpu.pipeline_mode<synchronous>, transform_indices = @transform_3, window_bounds = array<i64: 2, 128>}, {pipeline_mode = #tpu.pipeline_mode<synchronous>, transform_indices = @transform_4, window_bounds = array<i64: 128, 128>}, {transform_indices = @transform_5, window_bounds = array<i64: 8, 128>}]} {
    %c0 = arith.constant 0 : index
    %c0_0 = arith.constant 0 : index
    %0 = vector.load %arg1[%c0, %c0_0] : memref<8x1xf32, #tpu.memory_space<vmem>>, vector<8x1xf32>
    %c0_1 = arith.constant 0 : index
    %c0_2 = arith.constant 0 : index
    %1 = vector.load %arg2[%c0_1, %c0_2] : memref<1x128xf32, #tpu.memory_space<vmem>>, vector<1x128xf32>
    %2 = vector.broadcast %0 : vector<8x1xf32> to vector<8x128xf32>
    %3 = vector.broadcast %1 : vector<1x128xf32> to vector<8x128xf32>
    %4 = arith.mulf %2, %3 : vector<8x128xf32>
    %5 = math.cos %4 : vector<8x128xf32>
    %6 = math.sin %4 : vector<8x128xf32>
    %7 = tpu.concatenate %5, %6 in 1 : vector<8x128xf32>, vector<8x128xf32> -> vector<8x256xf32>
    %8 = arith.truncf %7 : vector<8x256xf32> to vector<8x256xbf16>
    %c0_3 = arith.constant 0 : index
    %c0_4 = arith.constant 0 : index
    %9 = vector.load %arg3[%c0_3, %c0_4] : memref<256x128xbf16, #tpu.memory_space<vmem>>, vector<256x128xbf16>
    %cst = arith.constant dense<0.000000e+00> : vector<8x128xf32>
    %10 = tpu.matmul %8, %9, %cst {dimension_numbers = #tpu.dot_dimension_numbers<[1], [0], [0], [1], [0, 0, 1, 1], [], []>} : vector<8x256xbf16>, vector<256x128xbf16>, vector<8x128xf32> -> vector<8x128xf32>
    %c0_5 = arith.constant 0 : index
    %c0_6 = arith.constant 0 : index
    %11 = vector.load %arg4[%c0_5, %c0_6] : memref<2x128xf32, #tpu.memory_space<vmem>>, vector<1x128xf32>
    %12 = vector.broadcast %11 : vector<1x128xf32> to vector<8x128xf32>
    %13 = arith.addf %10, %12 : vector<8x128xf32>
    %14 = arith.negf %13 : vector<8x128xf32>
    %15 = math.exp %14 : vector<8x128xf32>
    %cst_7 = arith.constant 1.000000e+00 : f32
    %16 = vector.broadcast %cst_7 : f32 to vector<8x128xf32>
    %17 = arith.addf %16, %15 : vector<8x128xf32>
    %18 = arith.divf %16, %17 : vector<8x128xf32>
    %19 = arith.mulf %13, %18 : vector<8x128xf32>
    %20 = arith.truncf %19 : vector<8x128xf32> to vector<8x128xbf16>
    %c0_8 = arith.constant 0 : index
    %c0_9 = arith.constant 0 : index
    %21 = vector.load %arg5[%c0_8, %c0_9] : memref<128x128xbf16, #tpu.memory_space<vmem>>, vector<128x128xbf16>
    %cst_10 = arith.constant dense<0.000000e+00> : vector<8x128xf32>
    %22 = tpu.matmul %20, %21, %cst_10 {dimension_numbers = #tpu.dot_dimension_numbers<[1], [0], [0], [1], [0, 0, 1, 1], [], []>} : vector<8x128xbf16>, vector<128x128xbf16>, vector<8x128xf32> -> vector<8x128xf32>
    %c1 = arith.constant 1 : index
    %c0_11 = arith.constant 0 : index
    %23 = vector.load %arg4[%c1, %c0_11] : memref<2x128xf32, #tpu.memory_space<vmem>>, vector<1x128xf32>
    %24 = vector.broadcast %23 : vector<1x128xf32> to vector<8x128xf32>
    %25 = arith.addf %22, %24 : vector<8x128xf32>
    %c0_12 = arith.constant 0 : index
    %c0_13 = arith.constant 0 : index
    %26 = vector.load %arg6[%c0_12, %c0_13] : memref<8x128xf32, #tpu.memory_space<vmem>>, vector<8x128xf32>
    tpu.vector_store %arg6[%c0_12, %c0_13], %25 {strides = array<i32>} : memref<8x128xf32, #tpu.memory_space<vmem>>, vector<8x128xf32>,
    return
  }
  func.func @transform_0(%arg0: i32) -> (i32, i32) {
    %c0_i32 = arith.constant 0 : i32
    %c0_i32_0 = arith.constant 0 : i32
    return %arg0, %c0_i32 : i32, i32
  }
  func.func @transform_1(%arg0: i32) -> (i32, i32) {
    %c0_i32 = arith.constant 0 : i32
    %c0_i32_0 = arith.constant 0 : i32
    %c0_i32_1 = arith.constant 0 : i32
    return %c0_i32, %c0_i32_0 : i32, i32
  }
  func.func @transform_2(%arg0: i32) -> (i32, i32) {
    %c0_i32 = arith.constant 0 : i32
    %c0_i32_0 = arith.constant 0 : i32
    %c0_i32_1 = arith.constant 0 : i32
    return %c0_i32, %c0_i32_0 : i32, i32
  }
  func.func @transform_3(%arg0: i32) -> (i32, i32) {
    %c0_i32 = arith.constant 0 : i32
    %c0_i32_0 = arith.constant 0 : i32
    %c0_i32_1 = arith.constant 0 : i32
    return %c0_i32, %c0_i32_0 : i32, i32
  }
  func.func @transform_4(%arg0: i32) -> (i32, i32) {
    %c0_i32 = arith.constant 0 : i32
    %c0_i32_0 = arith.constant 0 : i32
    %c0_i32_1 = arith.constant 0 : i32
    return %c0_i32, %c0_i32_0 : i32, i32
  }
  func.func @transform_5(%arg0: i32) -> (i32, i32) {
    %c0_i32 = arith.constant 0 : i32
    %c0_i32_0 = arith.constant 0 : i32
    return %arg0, %c0_i32 : i32, i32
  }
}

</mosaic_0001>

<bundles_post_ra>
// kernel: tpu_custom_call.1
= control target key start
LH: loop header
LB: loop body
LE: loop exit
PB: predicated region body
PF: predicated region fallthrough
CT: control target
= control target key end

     0   :  { %10 = vsyncpa [#allocation3], 0  ;;  %s999_s0 = inlined_call_operand.vmem [shape: f32[8,1], index: 0, kind: input, shape index: {}]   ;;  %s1000_s1 = inlined_call_operand.vmem [shape: f32[1,128], index: 1, kind: input, shape index: {}]   ;;  %s1001_s2 = inlined_call_operand.hbm [shape: bf16[256,128], index: 2, kind: input, shape index: {}]   ;;  %s1002_s3 = inlined_call_operand.vmem [shape: f32[2,128], index: 3, kind: input, shape index: {}]   ;;  %s1003_s4 = inlined_call_operand.hbm [shape: bf16[128,128], index: 4, kind: input, shape index: {}]   ;;  %s1004_s5 = inlined_call_operand.hbm [shape: f32[8,128], index: 5, kind: output, shape index: {}]  }
   0x1   :  { %11 = vsyncpa [#allocation6], 0 }
   0x2   :  { %12 = vsyncpa [#allocation4], 0  ;;  %s21_s20 = sshll.u32 %s1001_s2, 4  ;;  %s875_s21 = smov [#allocation2]   ;;  %s22_s20 = int_to_ptr.hbm [resolvable:$true] %s21_s20 }
   0x3   :  { %s23_s22 = sshll.u32 %s875_s21, 4  ;;  %s36_s25 = sshll.u32 %s1003_s4, 4  ;;  %s24_s22 = int_to_ptr.vmem [resolvable:$true] %s23_s22  ;;  %s37_s25 = int_to_ptr.hbm [resolvable:$true] %s36_s25 }
   0x4   :  { %s876_s26 = smov 64   ;;  %s877_s27 = smov 4  }
   0x5   :  { %29 = dma.hbm_to_vmem [thread:$0]  %s22_s20, 2048, %s24_s22, [#allocation3], %s876_s26, %s876_s26, %s877_s27  }
   0x6   :  { %s878_s28 = smov [#allocation5]  }
   0x7   :  { %s38_s29 = sshll.u32 %s878_s28, 4  ;;  %s39_s29 = int_to_ptr.vmem [resolvable:$true] %s38_s29 }
   0x8   :  { %44 = dma.hbm_to_vmem [thread:$0]  %s37_s25, 1024, %s39_s29, [#allocation6], %s876_s26, %s876_s26, %s877_s27  }
   0x9   :  { %869 = dma.done.wait [#allocation3], 2048  }
   0xa   :  { %870 = vsyncadd [#allocation3], 4294965248 }
   0xb   :  { %871 = dma.done.wait [#allocation6], 1024  }
   0xc   :  { %872 = vsyncadd [#allocation6], 4294966272  ;;  %v879_v0 = vmov 0   ;;  %v53_v1 = vld [vmem:[%s999_s0] sm:$0xff]  ;;  %v760_v2 = vld [vmem:[#allocation2 + $0x38] sm:$0xff]  ;;  %s886_s9 = smov [#allocation7]  }
   0xd   :  { %789 = vset.pattern.permute.xlu0 %v879_v0  ;;  %v768_v3 = vld [vmem:[#allocation2 + $0x78] sm:$0xff]  ;;  %505 = vmatpush.bf16.msra.mxu0 %v760_v2  ;;  %v759_v4 = vld [vmem:[#allocation2 + $0x30] sm:$0xff]  ;;  %v790_v6 = vld [vmem:[%s1000_s1] ss:$0 sm:$0xff]  ;;  %v880_v30 = vmov 683565275  }
   0xe   :  { %57 = vperm.xlu0 %789, %v53_v1   ;;  %518 = vmatpush.bf16.msra.mxu1 %v768_v3  ;;  %v767_v5 = vld [vmem:[#allocation2 + $0x70] sm:$0xff]  ;;  %v758_v7 = vld [vmem:[#allocation2 + $0x28] sm:$0xff]  ;;  %v757_v11 = vld [vmem:[#allocation2 + $0x20] sm:$0xff]  ;;  %v881_v32 = vmov 2475754826   ;;  %s637_s10 = sshll.u32 %s886_s9, 4  ;;  %s638_s10 = int_to_ptr.vmem [resolvable:$true] %s637_s10 }
   0xf   :  { %v766_v8 = vld [vmem:[#allocation2 + $0x68] sm:$0xff]  ;;  %v765_v12 = vld [vmem:[#allocation2 + $0x60] sm:$0xff]  ;;  %v756_v15 = vld [vmem:[#allocation2 + $0x18] sm:$0xff]  ;;  %v882_v34 = vmov 2131351028   ;;  %s639_s13 = sshll.u32 %s1004_s5, 4  ;;  %s640_s13 = int_to_ptr.hbm [resolvable:$true] %s639_s13 }
  0x10   :  { %v764_v16 = vld [vmem:[#allocation2 + $0x58] sm:$0xff]  ;;  %v755_v20 = vld [vmem:[#allocation2 + $0x10] sm:$0xff]  ;;  %v754_v25 = vld [vmem:[#allocation2 + $0x8] sm:$0xff]  ;;  %v883_v36 = vmov 2102212464  }
  0x11   :  { %506 = vmatpush.bf16.msra.mxu0 %v759_v4  ;;  %v763_v21 = vld [vmem:[#allocation2 + $0x50] sm:$0xff]  ;;  %v762_v27 = vld [vmem:[#allocation2 + $0x48] sm:$0xff]  ;;  %v884_v41 = vmov 920167782   ;;  %v753_v43 = vld [vmem:[#allocation2] sm:$0xff] }
  0x12   :  { %519 = vmatpush.bf16.msra.mxu1 %v767_v5  ;;  %v885_v45 = vmov 1326507024   ;;  %v761_v48 = vld [vmem:[#allocation2 + $0x40] sm:$0xff] }
  0x15   :  { %507 = vmatpush.bf16.msra.mxu0 %v758_v7 }
  0x16   :  { %520 = vmatpush.bf16.msra.mxu1 %v766_v8 }
  0x19   :  { %508 = vmatpush.bf16.msra.mxu0 %v757_v11 }
  0x1a   :  { %521 = vmatpush.bf16.msra.mxu1 %v765_v12 }
  0x1d   :  { %509 = vmatpush.bf16.msra.mxu0 %v756_v15 }
  0x1e   :  { %522 = vmatpush.bf16.msra.mxu1 %v764_v16 }
  0x21   :  { %510 = vmatpush.bf16.msra.mxu0 %v755_v20 }
  0x22   :  { %523 = vmatpush.bf16.msra.mxu1 %v763_v21 }
  0x25   :  { %511 = vmatpush.bf16.msra.mxu0 %v754_v25 }
  0x26   :  { %524 = vmatpush.bf16.msra.mxu1 %v762_v27 }
  0x29   :  { %512 = vmatpush.bf16.msra.mxu0 %v753_v43 }
  0x2a   :  { %525 = vmatpush.bf16.msra.mxu1 %v761_v48 }
  0x80   :  { %v58_v9 = vpop.permute.xlu0 %57 }
  0x81   :  { %v930_v10 = vmul.f32 %v790_v6, %v58_v9 }
  0x83   :  { %v67_v13 = vand.u32 2139095040, %v930_v10  ;;  %v64_v17 = vand.u32 2147483647, %v930_v10  ;;  %vm66_vm12 = vcmp.lt.s32.totalorder %v930_v10, 0 }
  0x85   :  { %v68_v14 = vshrl.u32 %v67_v13, 23  ;;  %v71_v22 = vand.u32 8388607, %v64_v17  ;;  %vm65_vm13 = vcmp.le.f32.partialorder %v64_v17, 0.7853982 }
  0x87   :  { %v650_v18 = vadd.s32 4294967169, %v68_v14  ;;  %v72_v26 = vor.u32 8388608, %v71_v22 }
  0x89   :  { %v74_v19 = vadd.s32 1, %v650_v18  ;;  %v946_v47 = vshll.u32 %v72_v26, 8 }
  0x8b   :  { %vm75_vm0 = vcmp.gt.s32.totalorder %v74_v19, 0  ;;  %v113_v60 = vand.u32 65535, %v946_v47  ;;  %v114_v62 = vshrl.u32 %v946_v47, 16 }
  0x8c   :  { %v76_v23 = vsel %vm75_vm0, %v74_v19, 0 }
  0x8d   :  { %v78_v24 = vand.u32 31, %v76_v23  ;;  %v936_v28 = vshrl.u32 %v76_v23, 5 }
  0x8f   :  { %v938_v29 = vsub.s32 32, %v78_v24  ;;  %v81_v31 = vshll.u32 %v880_v30, %v78_v24  ;;  %v84_v33 = vshll.u32 %v881_v32, %v78_v24  ;;  %v87_v35 = vshll.u32 %v882_v34, %v78_v24 }
  0x90   :  { %v90_v37 = vshll.u32 %v883_v36, %v78_v24  ;;  %v93_v44 = vshll.u32 %v884_v41, %v78_v24  ;;  %vm96_vm1 = vcmp.lt.s32.totalorder %v936_v28, 1  ;;  %vm99_vm2 = vcmp.lt.s32.totalorder %v936_v28, 4 }
  0x91   :  { %v82_v38 = vshrl.u32 %v881_v32, %v938_v29  ;;  %v85_v39 = vshrl.u32 %v882_v34, %v938_v29  ;;  %v88_v40 = vshrl.u32 %v883_v36, %v938_v29  ;;  %v91_v42 = vshrl.u32 %v884_v41, %v938_v29 }
  0x92   :  { %v94_v46 = vshrl.u32 %v885_v45, %v938_v29  ;;  %vm98_vm3 = vcmp.lt.s32.totalorder %v936_v28, 3  ;;  %vm97_vm4 = vcmp.lt.s32.totalorder %v936_v28, 2  ;;  %v80_v25 = vshrl.u32 %v880_v30, %v938_v29 }
  0x93   :  { %v83_v49 = vor.u32 %v82_v38, %v81_v31  ;;  %v86_v50 = vor.u32 %v85_v39, %v84_v33  ;;  %v89_v51 = vor.u32 %v88_v40, %v87_v35  ;;  %v92_v52 = vor.u32 %v91_v42, %v90_v37 }
  0x94   :  { %v95_v53 = vor.u32 %v94_v46, %v93_v44 }
  0x95   :  { %v104_v54 = vsel %vm96_vm1, %v83_v49, %v86_v50  ;;  %v105_v55 = vsel %vm99_vm2, %v92_v52, 920167782  ;;  %v108_v56 = vsel %vm96_vm1, %v86_v50, %v89_v51  ;;  %v101_v22 = vsel %vm99_vm2, %v89_v51, 2102212464 }
  0x96   :  { %v106_v57 = vsel %vm98_vm3, %v89_v51, %v105_v55  ;;  %v109_v58 = vsel %vm99_vm2, %v95_v53, 1326507024  ;;  %v100_v34 = vsel %vm96_vm1, %v80_v25, %v83_v49  ;;  %v102_v35 = vsel %vm98_vm3, %v86_v50, %v101_v22 }
  0x97   :  { %v110_v59 = vsel %vm98_vm3, %v92_v52, %v109_v58  ;;  %v107_v61 = vsel %vm97_vm4, %v104_v54, %v106_v57  ;;  %v103_v30 = vsel %vm97_vm4, %v100_v34, %v102_v35 }
  0x98   :  { %v111_v63 = vsel %vm97_vm4, %v108_v56, %v110_v59  ;;  %v137_v1 = vand.u32 65535, %v107_v61  ;;  %v138_v2 = vshrl.u32 %v107_v61, 16  ;;  %v157_v44 = vmul.u32 %v946_v47, %v103_v30 }
  0x99   :  { %v115_v3 = vand.u32 65535, %v111_v63  ;;  %v116_v4 = vshrl.u32 %v111_v63, 16  ;;  %vm207_vm4 = vweird.f32 %v930_v10 }
  0x9a   :  { %v140_v5 = vmul.u32 %v138_v2, %v113_v60  ;;  %v141_v6 = vmul.u32 %v137_v1, %v114_v62  ;;  %v139_v9 = vmul.u32 %v137_v1, %v113_v60  ;;  %v142_v14 = vmul.u32 %v138_v2, %v114_v62 }
  0x9b   :  { %v118_v7 = vmul.u32 %v116_v4, %v113_v60  ;;  %v119_v8 = vmul.u32 %v115_v3, %v114_v62  ;;  %v117_v12 = vmul.u32 %v115_v3, %v113_v60  ;;  %v120_v15 = vmul.u32 %v116_v4, %v114_v62 }
  0x9c   :  { %v143_v11 = vshll.u32 %v140_v5, 16  ;;  %v145_v16 = vshll.u32 %v141_v6, 16  ;;  %v144_v32 = vshrl.u32 %v140_v5, 16  ;;  %v146_v38 = vshrl.u32 %v141_v6, 16 }
  0x9d   :  { %v121_v13 = vshll.u32 %v118_v7, 16  ;;  %v123_v19 = vshll.u32 %v119_v8, 16  ;;  %v122_v36 = vshrl.u32 %v118_v7, 16  ;;  %v124_v40 = vshrl.u32 %v119_v8, 16 }
  0x9e   :  { %vm147_vm5 = vc.u32 %v139_v9, %v143_v11  ;;  %v149_v18 = vadd.s32 %v143_v11, %v139_v9 }
  0x9f   :  { %vm125_vm6 = vc.u32 %v117_v12, %v121_v13  ;;  %v127_v20 = vadd.s32 %v121_v13, %v117_v12  ;;  %v148_v21 = vsel %vm147_vm5, 1, %v879_v0 }
  0xa0   :  { %v126_v23 = vsel %vm125_vm6, 1, %v879_v0  ;;  %v150_v24 = vadd.s32 %v148_v21, %v142_v14  ;;  %vm151_vm7 = vc.u32 %v149_v18, %v145_v16 }
  0xa1   :  { %v128_v26 = vadd.s32 %v126_v23, %v120_v15  ;;  %vm129_vm8 = vc.u32 %v127_v20, %v123_v19  ;;  %v152_v27 = vsel %vm151_vm7, 1, %v879_v0 }
  0xa2   :  { %v130_v31 = vsel %vm129_vm8, 1, %v879_v0  ;;  %v154_v33 = vadd.s32 %v152_v27, %v150_v24  ;;  %v153_v0 = vadd.s32 %v149_v18, %v145_v16 }
  0xa3   :  { %v132_v37 = vadd.s32 %v130_v31, %v128_v26 }
  0xa4   :  { %v155_v39 = vadd.s32 %v154_v33, %v144_v32 }
  0xa5   :  { %v133_v29 = vadd.s32 %v132_v37, %v122_v36 }
  0xa6   :  { %v156_v41 = vadd.s32 %v155_v39, %v146_v38 }
  0xa7   :  { %v134_v42 = vadd.s32 %v133_v29, %v124_v40 }
  0xa8   :  { %v160_v43 = vadd.s32 1, %v156_v41 }
  0xa9   :  { %vm159_vm9 = vc.u32 %v134_v42, %v153_v0  ;;  %v158_v56 = vadd.s32 %v153_v0, %v134_v42  ;;  %v775_v42 = vld [vmem:[#allocation5 + $0x30] sm:$0xff]  ;;  %v774_v0 = vld [vmem:[#allocation5 + $0x28] sm:$0xff] }
  0xaa   :  { %v161_v45 = vsel %vm159_vm9, %v160_v43, %v156_v41  ;;  %v776_v41 = vld [vmem:[#allocation5 + $0x38] sm:$0xff]  ;;  %v773_v43 = vld [vmem:[#allocation5 + $0x20] sm:$0xff] }
  0xab   :  { %v162_v46 = vadd.s32 %v161_v45, %v157_v44  ;;  %618 = vmatpush.bf16.msra.mxu2 %v776_v41  ;;  %v772_v44 = vld [vmem:[#allocation5 + $0x18] sm:$0xff]  ;;  %v771_v45 = vld [vmem:[#allocation5 + $0x10] sm:$0xff] }
  0xad   :  { %v163_v48 = vadd.s32 536870912, %v162_v46 }
  0xaf   :  { %v164_v49 = vshrl.u32 %v163_v48, 30  ;;  %619 = vmatpush.bf16.msra.mxu2 %v775_v42 }
  0xb1   :  { %v165_v50 = vshll.u32 %v164_v49, 30  ;;  %v188_v6 = vsub.s32 4, %v164_v49 }
  0xb3   :  { %v166_v51 = vsub.s32 %v162_v46, %v165_v50  ;;  %v189_v12 = vsel %vm66_vm12, %v188_v6, %v164_v49  ;;  %620 = vmatpush.bf16.msra.mxu2 %v774_v0  ;;  %v770_v46 = vld [vmem:[#allocation5 + $0x8] sm:$0xff] }
  0xb4   :  { %v191_v15 = vsel %vm65_vm13, 0, %v189_v12 }
  0xb5   :  { %vm167_vm10 = vcmp.lt.s32.totalorder %v166_v51, 0  ;;  %v168_v52 = vsub.s32 0, %v166_v51  ;;  %v362_v21 = vadd.s32 3, %v191_v15  ;;  %v208_v25 = vand.u32 3, %v191_v15 }
  0xb7   :  { %v169_v53 = vsel %vm167_vm10, %v168_v52, %v166_v51  ;;  %v363_v26 = vand.u32 3, %v362_v21  ;;  %vm209_vm14 = vcmp.lt.s32.totalorder %v208_v25, 2  ;;  %vm210_vm15 = vcmp.eq.s32.totalorder %v208_v25, 0  ;;  %621 = vmatpush.bf16.msra.mxu2 %v773_v43 }
  0xb8   :  { %v170_v54 = vclz %v169_v53  ;;  %vm213_vm0 = vcmp.eq.s32.totalorder %v208_v25, 2 }
  0xb9   :  { %vm364_vm1 = vcmp.lt.s32.totalorder %v363_v26, 2  ;;  %vm365_vm2 = vcmp.eq.s32.totalorder %v363_v26, 0  ;;  %vm368_vm3 = vcmp.eq.s32.totalorder %v363_v26, 2 }
  0xba   :  { %v651_v55 = vadd.s32 4294967294, %v170_v54 }
  0xbb   :  { %622 = vmatpush.bf16.msra.mxu2 %v772_v44 }
  0xbc   :  { %vm652_vm11 = vcmp.lt.s32.totalorder %v651_v55, 0 }
  0xbd   :  { %v173_v28 = vsel %vm652_vm11, 0, %v651_v55 }
  0xbe   :  { %v174_v57 = vsub.s32 32, %v173_v28  ;;  %v178_v58 = vsub.s32 4294967266, %v173_v28  ;;  %v175_v59 = vshll.u32 %v166_v51, %v173_v28  ;;  %v769_v51 = vld [vmem:[#allocation5] sm:$0xff] }
  0xbf   :  { %623 = vmatpush.bf16.msra.mxu2 %v771_v45 }
  0xc0   :  { %v176_v60 = vshrl.u32 %v158_v56, %v174_v57  ;;  %v179_v47 = vadd.s32 127, %v178_v58 }
  0xc2   :  { %v177_v61 = vor.u32 %v176_v60, %v175_v59  ;;  %v180_v62 = vshll.u32 %v179_v47, 23 }
  0xc3   :  { %624 = vmatpush.bf16.msra.mxu2 %v770_v46 }
  0xc4   :  { %v181_v63 = vor.u32 4788187, %v180_v62  ;;  %v184_v2 = vcvt.s32.f32 %v177_v61 }
  0xc6   :  { %v182_v1 = vand.u32 2147483647, %v181_v63 }
  0xc7   :  { %625 = vmatpush.bf16.msra.mxu2 %v769_v51 }
  0xc8   :  { %v185_v3 = vmul.f32 %v184_v2, %v182_v1 }
  0xca   :  { %v186_v4 = vxor.u32 2147483648, %v185_v3 }
  0xcc   :  { %v187_v5 = vsel %vm66_vm12, %v186_v4, %v185_v3 }
  0xcd   :  { %v190_v7 = vsel %vm65_vm13, %v930_v10, %v187_v5  ;;  %v791_v10 = vld [vmem:[%s1002_s3] ss:$0 sm:$0xff]  ;;  %v792_v5 = vld [vmem:[%s1002_s3 + $0x1] ss:$0 sm:$0xff] }
  0xce   :  { %v192_v8 = vmul.f32 %v190_v7, %v190_v7 }
  0xd0   :  { %v193_v9 = vmul.f32 -0.001358992, %v192_v8  ;;  %v200_v11 = vmul.f32 -0.00019511016, %v192_v8 }
  0xd2   :  { %v194_v13 = vadd.f32 0.041655596, %v193_v9  ;;  %v201_v14 = vadd.f32 0.008332121, %v200_v11 }
  0xd4   :  { %v195_v16 = vmul.f32 %v194_v13, %v192_v8  ;;  %v202_v18 = vmul.f32 %v201_v14, %v192_v8 }
  0xd6   :  { %v196_v19 = vadd.f32 -0.4999988, %v195_v16  ;;  %v203_v20 = vadd.f32 -0.16666654, %v202_v18 }
  0xd8   :  { %v197_v22 = vmul.f32 %v196_v19, %v192_v8  ;;  %v204_v23 = vmul.f32 %v203_v20, %v192_v8 }
  0xda   :  { %v198_v24 = vadd.f32 1.0, %v197_v22  ;;  %v205_v17 = vadd.f32 1.0, %v204_v23 }
  0xdc   :  { %v206_v27 = vmul.f32 %v205_v17, %v190_v7  ;;  %v214_v31 = vxor.u32 2147483648, %v198_v24 }
  0xde   :  { %v211_v32 = vxor.u32 2147483648, %v206_v27  ;;  %v215_v34 = vsel %vm213_vm0, %v214_v31, %v206_v27  ;;  %v370_v36 = vsel %vm368_vm3, %v214_v31, %v206_v27 }
  0xe0   :  { %v212_v33 = vsel %vm210_vm15, %v198_v24, %v211_v32  ;;  %v367_v35 = vsel %vm365_vm2, %v198_v24, %v211_v32 }
  0xe1   :  { %v216_v37 = vsel %vm209_vm14, %v212_v33, %v215_v34  ;;  %v371_v38 = vsel %vm364_vm1, %v367_v35, %v370_v36 }
  0xe2   :  { %v217_v39 = vsel %vm207_vm4, nan, %v216_v37  ;;  %v372_v40 = vsel %vm207_vm4, nan, %v371_v38 }
  0xe3   :  { %v373_v29 = vpack.c.bf16 %v217_v39, %v217_v39  ;;  %v374_v30 = vpack.c.bf16 %v372_v40, %v372_v40 }
  0xe5   :  { %513 = vmatmul.bf16.vlgmr.msra.gmra.mxu0 %v373_v29  ;;  %526 = vmatmul.bf16.vlgmr.msra.gmra.mxu1 %v374_v30 }
 0x162   :  { %v514_v48 = vpop.f32.mrf.mxu0  ;;  %v527_v49 = vpop.f32.mrf.mxu1 }
 0x163   :  { %v515_v50 = vadd.f32 %v791_v10, %v514_v48 }
 0x165   :  { %v528_v52 = vadd.f32 %v527_v49, %v515_v50 }
 0x167   :  { %v720_v53 = vmul.f32 -1.442695, %v528_v52 }
 0x169   :  { %793 = vpow2.f32 %v720_v53 }
 0x16a   :  { %v516_v54 = vpop.f32.mrf.mxu0  ;;  %v529_v55 = vpop.f32.mrf.mxu1 }
 0x16f   :  { %v794_v28 = vpop.eup %793 }
 0x170   :  { %v534_v56 = vadd.f32 1.0, %v794_v28 }
 0x172   :  { %795 = vrcp.f32 %v534_v56  ;;  %v546_v60 = vand.u32 2147483648, %v534_v56  ;;  %v544_v61 = vand.u32 2147483647, %v534_v56  ;;  %vm540_vm6 = vweird.f32 %v534_v56 }
 0x174   :  { %v547_v63 = vor.u32 1.1754944e-38, %v546_v60  ;;  %vm545_vm8 = vcmp.eq.f32.partialorder %v544_v61, 8.507059e+37 }
 0x178   :  { %v796_v57 = vpop.eup %795 }
 0x179   :  { %v536_v58 = vmul.f32 %v796_v57, %v534_v56  ;;  %vm541_vm5 = vweird.f32 %v796_v57 }
 0x17a   :  { %vm542_vm7 = vmor %vm540_vm6, %vm541_vm5 }
 0x17b   :  { %v537_v59 = vsub.f32 1.0, %v536_v58 }
 0x17d   :  { %v538_v47 = vmul.f32 %v796_v57, %v537_v59 }
 0x17f   :  { %v539_v62 = vadd.f32 %v796_v57, %v538_v47 }
 0x181   :  { %v543_v1 = vsel %vm542_vm7, %v796_v57, %v539_v62 }
 0x182   :  { %v548_v2 = vsel %vm545_vm8, %v547_v63, %v543_v1 }
 0x183   :  { %v550_v3 = vmul.f32 %v548_v2, %v528_v52 }
 0x185   :  { %v551_v4 = vpack.c.bf16 %v550_v3, %v550_v3 }
 0x187   :  { %626 = vmatmul.bf16.vlgmr.msra.gmra.mxu2 %v551_v4 }
 0x20a   :  { %v627_v6 = vpop.f32.mrf.mxu2 }
 0x20b   :  { %v628_v7 = vadd.f32 %v792_v5, %v627_v6 }
 0x20d   :  { %631 = vst [vmem:[#allocation7] sm:$0xff] %v628_v7 }
 0x20e   :  { %642 = dma.vmem_to_hbm [thread:$0]  %s638_s10, 128, %s640_s13, [#allocation4]  }
 0x212   :  { %v629_v8 = vpop.f32.mrf.mxu2 }
 0x213   :  { %873 = dma.done.wait [#allocation4], 128  }
 0x214   :  { %874 = vsyncadd [#allocation4], 4294967168 }
 0x215   :  { %647 = vsyncpa [#allocation3], 1 }
 0x216   :  { %648 = vsyncpa [#allocation6], 1 }
 0x217   :  { %649 = vsyncpa [#allocation4], 1 }

</bundles_post_ra>
